<compile_context>
chip_gen: v6e
topology: v6e:2x2x1
jax: 0.10.0
libtpu: 0.0.40
codegen_flags: <defaults>
</compile_context>

<pallas_src>
import functools

import jax
import jax.numpy as jnp
from jax.experimental import pallas as pl
from jax.experimental.pallas import tpu as pltpu


def _round_up(v, m):
    return ((v + m - 1) // m) * m


def _pick_row_chunk(Ho, Wo, max_rows=128):
    """Largest divisor tr of Ho with tr*Wo <= max_rows (f32 acc <= ~16 vregs)."""
    best = 1
    for tr in range(1, Ho + 1):
        if Ho % tr == 0 and tr * Wo <= max_rows:
            best = tr
    return best


def _vmem_limit_bytes():
    # generation-aware scoped-VMEM limit: 64 MiB on 128-MiB chips, 32 MiB else.
    try:
        kind = jax.devices()[0].device_kind.lower()
    except Exception:
        return 32 * 1024 * 1024
    if "v5" in kind or "v6" in kind:
        return 64 * 1024 * 1024
    return 32 * 1024 * 1024


# ---------------------------------------------------------------------------
# Pallas kernel: fused conv + folded-BN bias [+ residual] [+ ReLU]
#   taps: static tuple of (phase_or_None, row_offset); one MXU matmul per tap
#   with K = kw*cin (kw taps folded into K by the wrapper-side W-unfold).
# ---------------------------------------------------------------------------
def _make_conv_kernel(*, taps, tr, Wo, kc, c_out_p, add_residual, apply_relu):
    def kernel(*refs):
        if add_residual:
            x_ref, w_ref, b_ref, r_ref, o_ref = refs
        else:
            x_ref, w_ref, b_ref, o_ref = refs
            r_ref = None

        r0 = pl.program_id(1) * tr                      # output-row chunk start
        acc = None
        for t, (ph, off) in enumerate(taps):
            if ph is None:
                slab = x_ref[pl.ds(r0 + off, tr), :, :]          # (tr, Wo, kc) bf16
            else:
                slab = x_ref[ph, pl.ds(r0 + off, tr), :, :]      # phase-split input
            blk = slab.reshape(tr * Wo, kc)
            part = jnp.dot(blk, w_ref[t], preferred_element_type=jnp.float32)
            acc = part if acc is None else acc + part

        acc = acc + b_ref[...]                          # (1, c_out_p) f32 bias
        if add_residual:
            res = r_ref[...].reshape(tr * Wo, c_out_p).astype(jnp.float32)
            acc = acc + res
        if apply_relu:
            acc = jnp.maximum(acc, 0.0)
        o_ref[...] = acc.reshape(tr, Wo, c_out_p).astype(o_ref.dtype)

    return kernel


# ---------------------------------------------------------------------------
# Wrapper: one fused conv + folded BN [+ residual] [+ ReLU] pallas_call
# ---------------------------------------------------------------------------
def conv_bn_act(x_nhwc, w_oihw, gamma, beta, rmean, rvar, *, stride, pad,
                apply_relu, residual=None, c_out_p=None, eps=1e-5):
    """x_nhwc: (N, H, W, Cin); w_oihw: (Cout, Cin, kh, kw).
    Returns (N, Ho, Wo, c_out_p) bf16 with channels >= Cout zero-padded."""
    N, H, W, cin = x_nhwc.shape
    cout, cin_w, kh, kw = w_oihw.shape
    assert cin_w == cin, (cin_w, cin)
    c_out_p = c_out_p or _round_up(cout, 128)
    Ho = (H + 2 * pad - kh) // stride + 1
    Wo = (W + 2 * pad - kw) // stride + 1
    kc = kw * cin

    # fold BN scale into weights; bias is the only epilogue vector
    scale = gamma / jnp.sqrt(rvar + eps)
    bias = beta - rmean * scale
    wk = jnp.transpose(w_oihw, (2, 3, 1, 0))            # (kh, kw, cin, cout)
    wk = wk * scale[None, None, None, :]
    wk = wk.reshape(kh, kc, cout)
    wk = jnp.pad(wk, ((0, 0), (0, 0), (0, c_out_p - cout))).astype(jnp.bfloat16)
    bk = jnp.pad(bias, (0, c_out_p - cout)).reshape(1, c_out_p).astype(jnp.float32)

    xb = x_nhwc.astype(jnp.bfloat16)
    if pad > 0:
        xb = jnp.pad(xb, ((0, 0), (pad, pad), (pad, pad), (0, 0)))

    if stride == 1:
        # W-only unfold: x_in[n, h, w, dx*cin + c] = x_pad[n, h, w+dx, c]
        if kw > 1:
            x_in = jnp.concatenate(
                [xb[:, :, dx:dx + Wo, :] for dx in range(kw)], axis=-1)
        else:
            x_in = xb[:, :, :Wo, :]
        taps = tuple((None, dy) for dy in range(kh))
        x_spec = pl.BlockSpec((None,) + tuple(x_in.shape[1:]),
                              lambda n, r: (n, 0, 0, 0))
    elif stride == 2 and kh == 3:
        # W-unfold with stride-2 column gather, then split rows into even/odd
        # phases so each dy tap is a unit-stride row slice.
        x_unf = jnp.concatenate(
            [xb[:, :, dx:dx + 2 * Wo:2, :] for dx in range(kw)], axis=-1)
        x_even = x_unf[:, 0::2][:, :Ho + 1]
        x_odd = x_unf[:, 1::2]
        nodd = x_odd.shape[1]
        if nodd < Ho + 1:
            x_odd = jnp.pad(x_odd, ((0, 0), (0, Ho + 1 - nodd), (0, 0), (0, 0)))
        else:
            x_odd = x_odd[:, :Ho + 1]
        x_in = jnp.stack([x_even, x_odd], axis=1)        # (N, 2, Ho+1, Wo, kc)
        taps = ((0, 0), (1, 0), (0, 1))                  # dy = 0, 1, 2
        x_spec = pl.BlockSpec((None,) + tuple(x_in.shape[1:]),
                              lambda n, r: (n, 0, 0, 0, 0))
    elif stride == 2 and kh == 1:
        # 1x1 stride-2 conv: gather the (0,0) phase, then it is a plain matmul
        x_in = xb[:, ::2, ::2, :][:, :Ho, :Wo, :]
        taps = ((None, 0),)
        x_spec = pl.BlockSpec((None,) + tuple(x_in.shape[1:]),
                              lambda n, r: (n, 0, 0, 0))
    else:
        raise NotImplementedError("unsupported stride/kernel combination")

    tr = _pick_row_chunk(Ho, Wo, max_rows=128)
    n_rc = Ho // tr

    in_specs = [
        x_spec,                                                      # resident
        pl.BlockSpec((kh, kc, c_out_p), lambda n, r: (0, 0, 0)),     # weights
        pl.BlockSpec((1, c_out_p), lambda n, r: (0, 0)),             # BN bias
    ]
    args = [x_in, wk, bk]
    if residual is not None:
        in_specs.append(pl.BlockSpec((None, tr, Wo, c_out_p),
                                     lambda n, r: (n, r, 0, 0)))
        args.append(residual.astype(jnp.bfloat16))

    kernel = _make_conv_kernel(taps=taps, tr=tr, Wo=Wo, kc=kc, c_out_p=c_out_p,
                               add_residual=residual is not None,
                               apply_relu=apply_relu)

    return pl.pallas_call(
        kernel,
        out_shape=jax.ShapeDtypeStruct((N, Ho, Wo, c_out_p), jnp.bfloat16),
        grid=(N, n_rc),
        in_specs=in_specs,
        out_specs=pl.BlockSpec((None, tr, Wo, c_out_p),
                               lambda n, r: (n, r, 0, 0)),
        compiler_params=pltpu.CompilerParams(
            dimension_semantics=("parallel", "parallel"),
            vmem_limit_bytes=_vmem_limit_bytes()),
    )(*args)


# ---------------------------------------------------------------------------
# BasicBlock forward (NCHW in / NCHW out, matching the PyTorch module)
# ---------------------------------------------------------------------------
@functools.partial(jax.jit, static_argnames=("use_downsample",))
def basic_block_forward(x_nchw, params, use_downsample):
    x = jnp.transpose(x_nchw, (0, 2, 3, 1)).astype(jnp.bfloat16)   # NCHW -> NHWC
    cin = x.shape[-1]
    cout = params["w1"].shape[0]
    c_out_p = _round_up(cout, 128)

    if use_downsample:
        identity = conv_bn_act(x, params["dw"], params["dgamma"],
                               params["dbeta"], params["dmean"], params["dvar"],
                               stride=2, pad=0, apply_relu=False,
                               c_out_p=c_out_p)
        h = conv_bn_act(x, params["w1"], params["gamma1"], params["beta1"],
                        params["mean1"], params["var1"],
                        stride=2, pad=1, apply_relu=True, c_out_p=c_out_p)
    else:
        # only the residual needs the lane-dense (c_out_p) channel padding;
        # the conv input stays at its native channel count.
        identity = jnp.pad(x, ((0, 0), (0, 0), (0, 0), (0, c_out_p - cin)))
        h = conv_bn_act(x, params["w1"], params["gamma1"], params["beta1"],
                        params["mean1"], params["var1"],
                        stride=1, pad=1, apply_relu=True, c_out_p=c_out_p)

    # conv2 consumes only the real channels of h (padded ones are zero anyway)
    out = conv_bn_act(h[..., :cout], params["w2"], params["gamma2"],
                      params["beta2"], params["mean2"], params["var2"],
                      stride=1, pad=1, apply_relu=True,
                      residual=identity, c_out_p=c_out_p)

    out = out[..., :cout].astype(jnp.float32)
    return jnp.transpose(out, (0, 3, 1, 2))                         # NHWC -> NCHW


# ---------------------------------------------------------------------------
# Deterministic parameter init + pure-JAX reference for validation
# ---------------------------------------------------------------------------
def init_params(key, cin, cout, use_downsample):
    ks = jax.random.split(key, 12)
    p = {
        "w1": jax.random.normal(ks[0], (cout, cin, 3, 3), jnp.float32) * 0.1,
        "gamma1": 1.0 + 0.1 * jax.random.normal(ks[1], (cout,), jnp.float32),
        "beta1": 0.1 * jax.random.normal(ks[2], (cout,), jnp.float32),
        "mean1": 0.1 * jax.random.normal(ks[3], (cout,), jnp.float32),
        "var1": 0.5 + jax.random.uniform(ks[4], (cout,), jnp.float32),
        "w2": jax.random.normal(ks[5], (cout, cout, 3, 3), jnp.float32) * 0.1,
        "gamma2": 1.0 + 0.1 * jax.random.normal(ks[6], (cout,), jnp.float32),
        "beta2": 0.1 * jax.random.normal(ks[7], (cout,), jnp.float32),
        "mean2": 0.1 * jax.random.normal(ks[8], (cout,), jnp.float32),
        "var2": 0.5 + jax.random.uniform(ks[9], (cout,), jnp.float32),
    }
    if use_downsample:
        kd = jax.random.split(ks[10], 5)
        p.update({
            "dw": jax.random.normal(kd[0], (cout, cin, 1, 1), jnp.float32) * 0.1,
            "dgamma": 1.0 + 0.1 * jax.random.normal(kd[1], (cout,), jnp.float32),
            "dbeta": 0.1 * jax.random.normal(kd[2], (cout,), jnp.float32),
            "dmean": 0.1 * jax.random.normal(kd[3], (cout,), jnp.float32),
            "dvar": 0.5 + jax.random.uniform(kd[4], (cout,), jnp.float32),
        })
    return p


def _ref_conv(x, w, stride, pad):
    return jax.lax.conv_general_dilated(
        x, w, (stride, stride), ((pad, pad), (pad, pad)),
        dimension_numbers=("NCHW", "OIHW", "NCHW"))


def _ref_bn(x, g, b, m, v, eps=1e-5):
    s = g / jnp.sqrt(v + eps)
    return x * s[None, :, None, None] + (b - m * s)[None, :, None, None]


def reference_forward(x, p, use_downsample):
    stride1 = 2 if use_downsample else 1
    if use_downsample:
        idn = _ref_bn(_ref_conv(x, p["dw"], 2, 0),
                      p["dgamma"], p["dbeta"], p["dmean"], p["dvar"])
    else:
        idn = x
    h = jnp.maximum(_ref_bn(_ref_conv(x, p["w1"], stride1, 1),
                            p["gamma1"], p["beta1"], p["mean1"], p["var1"]), 0.0)
    o = _ref_bn(_ref_conv(h, p["w2"], 1, 1),
                p["gamma2"], p["beta2"], p["mean2"], p["var2"])
    return jnp.maximum(o + idn, 0.0)


if __name__ == "__main__":
    key = jax.random.PRNGKey(0)
    kx, kp1, kp2 = jax.random.split(key, 3)

    # Case 1: downsampling block, in=4 -> out=8, x: (2, 4, 16, 16) NCHW
    x1 = jax.random.normal(kx, (2, 4, 16, 16), jnp.float32)
    params1 = init_params(kp1, 4, 8, use_downsample=True)
    out1 = jax.block_until_ready(basic_block_forward(x1, params1, True))
    ref1 = reference_forward(x1, params1, True)
    assert out1.shape == (2, 8, 8, 8), out1.shape
    assert jnp.allclose(out1, ref1, atol=5e-2, rtol=5e-2), \
        float(jnp.max(jnp.abs(out1 - ref1)))

    # Case 2: identity block, in=out=8, x: (2, 8, 16, 16) NCHW
    x2 = jax.random.normal(kx, (2, 8, 16, 16), jnp.float32)
    params2 = init_params(kp2, 8, 8, use_downsample=False)
    out2 = jax.block_until_ready(basic_block_forward(x2, params2, False))
    ref2 = reference_forward(x2, params2, False)
    assert out2.shape == (2, 8, 16, 16), out2.shape
    assert jnp.allclose(out2, ref2, atol=5e-2, rtol=5e-2), \
        float(jnp.max(jnp.abs(out2 - ref2)))

    print("KERNEL_OK")
</pallas_src>

<mosaic_0001>
module attributes {stable_mosaic.version = 11 : i64} {
  func.func @kernel(%arg0: i32, %arg1: i32, %arg2: memref<1x8x8x4xbf16, #tpu.memory_space<vmem>>, %arg3: memref<1x4x128xbf16, #tpu.memory_space<vmem>>, %arg4: memref<1x128xf32, #tpu.memory_space<vmem>>, %arg5: memref<1x8x8x128xbf16, #tpu.memory_space<vmem>>) attributes {dimension_semantics = [#tpu.dimension_semantics<parallel>, #tpu.dimension_semantics<parallel>], iteration_bounds = array<i64: 2, 1>, scalar_prefetch = 0 : i64, scratch_operands = 0 : i64, tpu.core_type = #tpu.core_type<tc>, window_params = [{transform_indices = @transform_0, window_bounds = array<i64: 1, 8, 8, 4>}, {pipeline_mode = #tpu.pipeline_mode<synchronous>, transform_indices = @transform_1, window_bounds = array<i64: 1, 4, 128>}, {pipeline_mode = #tpu.pipeline_mode<synchronous>, transform_indices = @transform_2, window_bounds = array<i64: 1, 128>}, {transform_indices = @transform_3, window_bounds = array<i64: 1, 8, 8, 128>}]} {
    %c8_i32 = arith.constant 8 : i32
    %0 = arith.muli %arg1, %c8_i32 : i32
    %c0_i32 = arith.constant 0 : i32
    %1 = arith.addi %0, %c0_i32 : i32
    %c0 = arith.constant 0 : index
    %2 = arith.index_cast %1 : i32 to index
    %c0_0 = arith.constant 0 : index
    %c0_1 = arith.constant 0 : index
    %3 = vector.load %arg2[%c0, %2, %c0_0, %c0_1] : memref<1x8x8x4xbf16, #tpu.memory_space<vmem>>, vector<1x8x8x4xbf16>
    %4 = vector.shape_cast %3 : vector<1x8x8x4xbf16> to vector<8x8x4xbf16>
    %5 = vector.shape_cast %4 : vector<8x8x4xbf16> to vector<64x4xbf16>
    %c0_2 = arith.constant 0 : index
    %c0_3 = arith.constant 0 : index
    %c0_4 = arith.constant 0 : index
    %6 = vector.load %arg3[%c0_2, %c0_3, %c0_4] : memref<1x4x128xbf16, #tpu.memory_space<vmem>>, vector<1x4x128xbf16>
    %7 = vector.shape_cast %6 : vector<1x4x128xbf16> to vector<4x128xbf16>
    %cst = arith.constant dense<0.000000e+00> : vector<64x128xf32>
    %8 = tpu.matmul %5, %7, %cst {dimension_numbers = #tpu.dot_dimension_numbers<[1], [0], [0], [1], [0, 0, 1, 1], [], []>} : vector<64x4xbf16>, vector<4x128xbf16>, vector<64x128xf32> -> vector<64x128xf32>
    %c0_5 = arith.constant 0 : index
    %c0_6 = arith.constant 0 : index
    %9 = vector.load %arg4[%c0_5, %c0_6] : memref<1x128xf32, #tpu.memory_space<vmem>>, vector<1x128xf32>
    %10 = vector.broadcast %9 : vector<1x128xf32> to vector<64x128xf32>
    %11 = arith.addf %8, %10 : vector<64x128xf32>
    %12 = vector.shape_cast %11 : vector<64x128xf32> to vector<8x8x128xf32>
    %13 = arith.truncf %12 : vector<8x8x128xf32> to vector<8x8x128xbf16>
    %c0_7 = arith.constant 0 : index
    %c0_8 = arith.constant 0 : index
    %c0_9 = arith.constant 0 : index
    %c0_10 = arith.constant 0 : index
    %14 = vector.load %arg5[%c0_7, %c0_8, %c0_9, %c0_10] : memref<1x8x8x128xbf16, #tpu.memory_space<vmem>>, vector<1x8x8x128xbf16>
    %15 = vector.shape_cast %14 : vector<1x8x8x128xbf16> to vector<8x8x128xbf16>
    %16 = vector.shape_cast %13 : vector<8x8x128xbf16> to vector<1x8x8x128xbf16>
    tpu.vector_store %arg5[%c0_7, %c0_8, %c0_9, %c0_10], %16 {strides = array<i32>} : memref<1x8x8x128xbf16, #tpu.memory_space<vmem>>, vector<1x8x8x128xbf16>,
    return
  }
  func.func @transform_0(%arg0: i32, %arg1: i32) -> (i32, i32, i32, i32) {
    %c0_i32 = arith.constant 0 : i32
    %c0_i32_0 = arith.constant 0 : i32
    %c0_i32_1 = arith.constant 0 : i32
    %c0_i32_2 = arith.constant 0 : i32
    return %arg0, %c0_i32, %c0_i32_0, %c0_i32_1 : i32, i32, i32, i32
  }
  func.func @transform_1(%arg0: i32, %arg1: i32) -> (i32, i32, i32) {
    %c0_i32 = arith.constant 0 : i32
    %c0_i32_0 = arith.constant 0 : i32
    %c0_i32_1 = arith.constant 0 : i32
    %c0_i32_2 = arith.constant 0 : i32
    return %c0_i32, %c0_i32_0, %c0_i32_1 : i32, i32, i32
  }
  func.func @transform_2(%arg0: i32, %arg1: i32) -> (i32, i32) {
    %c0_i32 = arith.constant 0 : i32
    %c0_i32_0 = arith.constant 0 : i32
    %c0_i32_1 = arith.constant 0 : i32
    return %c0_i32, %c0_i32_0 : i32, i32
  }
  func.func @transform_3(%arg0: i32, %arg1: i32) -> (i32, i32, i32, i32) {
    %c0_i32 = arith.constant 0 : i32
    %c0_i32_0 = arith.constant 0 : i32
    %c0_i32_1 = arith.constant 0 : i32
    return %arg0, %arg1, %c0_i32, %c0_i32_0 : i32, i32, i32, i32
  }
}

module attributes {stable_mosaic.version = 11 : i64} {
  func.func @kernel(%arg0: i32, %arg1: i32, %arg2: memref<1x2x9x8x12xbf16, #tpu.memory_space<vmem>>, %arg3: memref<3x12x128xbf16, #tpu.memory_space<vmem>>, %arg4: memref<1x128xf32, #tpu.memory_space<vmem>>, %arg5: memref<1x8x8x128xbf16, #tpu.memory_space<vmem>>) attributes {dimension_semantics = [#tpu.dimension_semantics<parallel>, #tpu.dimension_semantics<parallel>], iteration_bounds = array<i64: 2, 1>, scalar_prefetch = 0 : i64, scratch_operands = 0 : i64, tpu.core_type = #tpu.core_type<tc>, window_params = [{transform_indices = @transform_0, window_bounds = array<i64: 1, 2, 9, 8, 12>}, {pipeline_mode = #tpu.pipeline_mode<synchronous>, transform_indices = @transform_1, window_bounds = array<i64: 3, 12, 128>}, {pipeline_mode = #tpu.pipeline_mode<synchronous>, transform_indices = @transform_2, window_bounds = array<i64: 1, 128>}, {transform_indices = @transform_3, window_bounds = array<i64: 1, 8, 8, 128>}]} {
    %c8_i32 = arith.constant 8 : i32
    %0 = arith.muli %arg1, %c8_i32 : i32
    %c0_i32 = arith.constant 0 : i32
    %1 = arith.addi %0, %c0_i32 : i32
    %c0 = arith.constant 0 : index
    %c0_0 = arith.constant 0 : index
    %2 = arith.index_cast %1 : i32 to index
    %c0_1 = arith.constant 0 : index
    %c0_2 = arith.constant 0 : index
    %3 = vector.load %arg2[%c0, %c0_0, %2, %c0_1, %c0_2] : memref<1x2x9x8x12xbf16, #tpu.memory_space<vmem>>, vector<1x1x8x8x12xbf16>
    %4 = vector.shape_cast %3 : vector<1x1x8x8x12xbf16> to vector<8x8x12xbf16>
    %5 = vector.shape_cast %4 : vector<8x8x12xbf16> to vector<64x12xbf16>
    %c0_3 = arith.constant 0 : index
    %c0_4 = arith.constant 0 : index
    %c0_5 = arith.constant 0 : index
    %6 = vector.load %arg3[%c0_3, %c0_4, %c0_5] : memref<3x12x128xbf16, #tpu.memory_space<vmem>>, vector<1x12x128xbf16>
    %7 = vector.shape_cast %6 : vector<1x12x128xbf16> to vector<12x128xbf16>
    %cst = arith.constant dense<0.000000e+00> : vector<64x128xf32>
    %8 = tpu.matmul %5, %7, %cst {dimension_numbers = #tpu.dot_dimension_numbers<[1], [0], [0], [1], [0, 0, 1, 1], [], []>} : vector<64x12xbf16>, vector<12x128xbf16>, vector<64x128xf32> -> vector<64x128xf32>
    %c0_i32_6 = arith.constant 0 : i32
    %9 = arith.addi %0, %c0_i32_6 : i32
    %c0_7 = arith.constant 0 : index
    %c1 = arith.constant 1 : index
    %10 = arith.index_cast %9 : i32 to index
    %c0_8 = arith.constant 0 : index
    %c0_9 = arith.constant 0 : index
    %11 = vector.load %arg2[%c0_7, %c1, %10, %c0_8, %c0_9] : memref<1x2x9x8x12xbf16, #tpu.memory_space<vmem>>, vector<1x1x8x8x12xbf16>
    %12 = vector.shape_cast %11 : vector<1x1x8x8x12xbf16> to vector<8x8x12xbf16>
    %13 = vector.shape_cast %12 : vector<8x8x12xbf16> to vector<64x12xbf16>
    %c1_10 = arith.constant 1 : index
    %c0_11 = arith.constant 0 : index
    %c0_12 = arith.constant 0 : index
    %14 = vector.load %arg3[%c1_10, %c0_11, %c0_12] : memref<3x12x128xbf16, #tpu.memory_space<vmem>>, vector<1x12x128xbf16>
    %15 = vector.shape_cast %14 : vector<1x12x128xbf16> to vector<12x128xbf16>
    %cst_13 = arith.constant dense<0.000000e+00> : vector<64x128xf32>
    %16 = tpu.matmul %13, %15, %cst_13 {dimension_numbers = #tpu.dot_dimension_numbers<[1], [0], [0], [1], [0, 0, 1, 1], [], []>} : vector<64x12xbf16>, vector<12x128xbf16>, vector<64x128xf32> -> vector<64x128xf32>
    %17 = arith.addf %8, %16 : vector<64x128xf32>
    %c1_i32 = arith.constant 1 : i32
    %18 = arith.addi %0, %c1_i32 : i32
    %c0_14 = arith.constant 0 : index
    %c0_15 = arith.constant 0 : index
    %19 = arith.index_cast %18 : i32 to index
    %c0_16 = arith.constant 0 : index
    %c0_17 = arith.constant 0 : index
    %20 = vector.load %arg2[%c0_14, %c0_15, %19, %c0_16, %c0_17] : memref<1x2x9x8x12xbf16, #tpu.memory_space<vmem>>, vector<1x1x8x8x12xbf16>
    %21 = vector.shape_cast %20 : vector<1x1x8x8x12xbf16> to vector<8x8x12xbf16>
    %22 = vector.shape_cast %21 : vector<8x8x12xbf16> to vector<64x12xbf16>
    %c2 = arith.constant 2 : index
    %c0_18 = arith.constant 0 : index
    %c0_19 = arith.constant 0 : index
    %23 = vector.load %arg3[%c2, %c0_18, %c0_19] : memref<3x12x128xbf16, #tpu.memory_space<vmem>>, vector<1x12x128xbf16>
    %24 = vector.shape_cast %23 : vector<1x12x128xbf16> to vector<12x128xbf16>
    %cst_20 = arith.constant dense<0.000000e+00> : vector<64x128xf32>
    %25 = tpu.matmul %22, %24, %cst_20 {dimension_numbers = #tpu.dot_dimension_numbers<[1], [0], [0], [1], [0, 0, 1, 1], [], []>} : vector<64x12xbf16>, vector<12x128xbf16>, vector<64x128xf32> -> vector<64x128xf32>
    %26 = arith.addf %17, %25 : vector<64x128xf32>
    %c0_21 = arith.constant 0 : index
    %c0_22 = arith.constant 0 : index
    %27 = vector.load %arg4[%c0_21, %c0_22] : memref<1x128xf32, #tpu.memory_space<vmem>>, vector<1x128xf32>
    %28 = vector.broadcast %27 : vector<1x128xf32> to vector<64x128xf32>
    %29 = arith.addf %26, %28 : vector<64x128xf32>
    %cst_23 = arith.constant 0.000000e+00 : f32
    %30 = vector.broadcast %cst_23 : f32 to vector<64x128xf32>
    %31 = arith.maximumf %29, %30 : vector<64x128xf32>
    %32 = vector.shape_cast %31 : vector<64x128xf32> to vector<8x8x128xf32>
    %33 = arith.truncf %32 : vector<8x8x128xf32> to vector<8x8x128xbf16>
    %c0_24 = arith.constant 0 : index
    %c0_25 = arith.constant 0 : index
    %c0_26 = arith.constant 0 : index
    %c0_27 = arith.constant 0 : index
    %34 = vector.load %arg5[%c0_24, %c0_25, %c0_26, %c0_27] : memref<1x8x8x128xbf16, #tpu.memory_space<vmem>>, vector<1x8x8x128xbf16>
    %35 = vector.shape_cast %34 : vector<1x8x8x128xbf16> to vector<8x8x128xbf16>
    %36 = vector.shape_cast %33 : vector<8x8x128xbf16> to vector<1x8x8x128xbf16>
    tpu.vector_store %arg5[%c0_24, %c0_25, %c0_26, %c0_27], %36 {strides = array<i32>} : memref<1x8x8x128xbf16, #tpu.memory_space<vmem>>, vector<1x8x8x128xbf16>,
    return
  }
  func.func @transform_0(%arg0: i32, %arg1: i32) -> (i32, i32, i32, i32, i32) {
    %c0_i32 = arith.constant 0 : i32
    %c0_i32_0 = arith.constant 0 : i32
    %c0_i32_1 = arith.constant 0 : i32
    %c0_i32_2 = arith.constant 0 : i32
    %c0_i32_3 = arith.constant 0 : i32
    return %arg0, %c0_i32, %c0_i32_0, %c0_i32_1, %c0_i32_2 : i32, i32, i32, i32, i32
  }
  func.func @transform_1(%arg0: i32, %arg1: i32) -> (i32, i32, i32) {
    %c0_i32 = arith.constant 0 : i32
    %c0_i32_0 = arith.constant 0 : i32
    %c0_i32_1 = arith.constant 0 : i32
    %c0_i32_2 = arith.constant 0 : i32
    return %c0_i32, %c0_i32_0, %c0_i32_1 : i32, i32, i32
  }
  func.func @transform_2(%arg0: i32, %arg1: i32) -> (i32, i32) {
    %c0_i32 = arith.constant 0 : i32
    %c0_i32_0 = arith.constant 0 : i32
    %c0_i32_1 = arith.constant 0 : i32
    return %c0_i32, %c0_i32_0 : i32, i32
  }
  func.func @transform_3(%arg0: i32, %arg1: i32) -> (i32, i32, i32, i32) {
    %c0_i32 = arith.constant 0 : i32
    %c0_i32_0 = arith.constant 0 : i32
    %c0_i32_1 = arith.constant 0 : i32
    return %arg0, %arg1, %c0_i32, %c0_i32_0 : i32, i32, i32, i32
  }
}

module attributes {stable_mosaic.version = 11 : i64} {
  func.func @kernel(%arg0: i32, %arg1: i32, %arg2: memref<1x10x8x24xbf16, #tpu.memory_space<vmem>>, %arg3: memref<3x24x128xbf16, #tpu.memory_space<vmem>>, %arg4: memref<1x128xf32, #tpu.memory_space<vmem>>, %arg5: memref<1x8x8x128xbf16, #tpu.memory_space<vmem>>, %arg6: memref<1x8x8x128xbf16, #tpu.memory_space<vmem>>) attributes {dimension_semantics = [#tpu.dimension_semantics<parallel>, #tpu.dimension_semantics<parallel>], iteration_bounds = array<i64: 2, 1>, scalar_prefetch = 0 : i64, scratch_operands = 0 : i64, tpu.core_type = #tpu.core_type<tc>, window_params = [{transform_indices = @transform_0, window_bounds = array<i64: 1, 10, 8, 24>}, {pipeline_mode = #tpu.pipeline_mode<synchronous>, transform_indices = @transform_1, window_bounds = array<i64: 3, 24, 128>}, {pipeline_mode = #tpu.pipeline_mode<synchronous>, transform_indices = @transform_2, window_bounds = array<i64: 1, 128>}, {transform_indices = @transform_3, window_bounds = array<i64: 1, 8, 8, 128>}, {transform_indices = @transform_4, window_bounds = array<i64: 1, 8, 8, 128>}]} {
    %c8_i32 = arith.constant 8 : i32
    %0 = arith.muli %arg1, %c8_i32 : i32
    %c0_i32 = arith.constant 0 : i32
    %1 = arith.addi %0, %c0_i32 : i32
    %c0 = arith.constant 0 : index
    %2 = arith.index_cast %1 : i32 to index
    %c0_0 = arith.constant 0 : index
    %c0_1 = arith.constant 0 : index
    %3 = vector.load %arg2[%c0, %2, %c0_0, %c0_1] : memref<1x10x8x24xbf16, #tpu.memory_space<vmem>>, vector<1x8x8x24xbf16>
    %4 = vector.shape_cast %3 : vector<1x8x8x24xbf16> to vector<8x8x24xbf16>
    %5 = vector.shape_cast %4 : vector<8x8x24xbf16> to vector<64x24xbf16>
    %c0_2 = arith.constant 0 : index
    %c0_3 = arith.constant 0 : index
    %c0_4 = arith.constant 0 : index
    %6 = vector.load %arg3[%c0_2, %c0_3, %c0_4] : memref<3x24x128xbf16, #tpu.memory_space<vmem>>, vector<1x24x128xbf16>
    %7 = vector.shape_cast %6 : vector<1x24x128xbf16> to vector<24x128xbf16>
    %cst = arith.constant dense<0.000000e+00> : vector<64x128xf32>
    %8 = tpu.matmul %5, %7, %cst {dimension_numbers = #tpu.dot_dimension_numbers<[1], [0], [0], [1], [0, 0, 1, 1], [], []>} : vector<64x24xbf16>, vector<24x128xbf16>, vector<64x128xf32> -> vector<64x128xf32>
    %c1_i32 = arith.constant 1 : i32
    %9 = arith.addi %0, %c1_i32 : i32
    %c0_5 = arith.constant 0 : index
    %10 = arith.index_cast %9 : i32 to index
    %c0_6 = arith.constant 0 : index
    %c0_7 = arith.constant 0 : index
    %11 = vector.load %arg2[%c0_5, %10, %c0_6, %c0_7] : memref<1x10x8x24xbf16, #tpu.memory_space<vmem>>, vector<1x8x8x24xbf16>
    %12 = vector.shape_cast %11 : vector<1x8x8x24xbf16> to vector<8x8x24xbf16>
    %13 = vector.shape_cast %12 : vector<8x8x24xbf16> to vector<64x24xbf16>
    %c1 = arith.constant 1 : index
    %c0_8 = arith.constant 0 : index
    %c0_9 = arith.constant 0 : index
    %14 = vector.load %arg3[%c1, %c0_8, %c0_9] : memref<3x24x128xbf16, #tpu.memory_space<vmem>>, vector<1x24x128xbf16>
    %15 = vector.shape_cast %14 : vector<1x24x128xbf16> to vector<24x128xbf16>
    %cst_10 = arith.constant dense<0.000000e+00> : vector<64x128xf32>
    %16 = tpu.matmul %13, %15, %cst_10 {dimension_numbers = #tpu.dot_dimension_numbers<[1], [0], [0], [1], [0, 0, 1, 1], [], []>} : vector<64x24xbf16>, vector<24x128xbf16>, vector<64x128xf32> -> vector<64x128xf32>
    %17 = arith.addf %8, %16 : vector<64x128xf32>
    %c2_i32 = arith.constant 2 : i32
    %18 = arith.addi %0, %c2_i32 : i32
    %c0_11 = arith.constant 0 : index
    %19 = arith.index_cast %18 : i32 to index
    %c0_12 = arith.constant 0 : index
    %c0_13 = arith.constant 0 : index
    %20 = vector.load %arg2[%c0_11, %19, %c0_12, %c0_13] : memref<1x10x8x24xbf16, #tpu.memory_space<vmem>>, vector<1x8x8x24xbf16>
    %21 = vector.shape_cast %20 : vector<1x8x8x24xbf16> to vector<8x8x24xbf16>
    %22 = vector.shape_cast %21 : vector<8x8x24xbf16> to vector<64x24xbf16>
    %c2 = arith.constant 2 : index
    %c0_14 = arith.constant 0 : index
    %c0_15 = arith.constant 0 : index
    %23 = vector.load %arg3[%c2, %c0_14, %c0_15] : memref<3x24x128xbf16, #tpu.memory_space<vmem>>, vector<1x24x128xbf16>
    %24 = vector.shape_cast %23 : vector<1x24x128xbf16> to vector<24x128xbf16>
    %cst_16 = arith.constant dense<0.000000e+00> : vector<64x128xf32>
    %25 = tpu.matmul %22, %24, %cst_16 {dimension_numbers = #tpu.dot_dimension_numbers<[1], [0], [0], [1], [0, 0, 1, 1], [], []>} : vector<64x24xbf16>, vector<24x128xbf16>, vector<64x128xf32> -> vector<64x128xf32>
    %26 = arith.addf %17, %25 : vector<64x128xf32>
    %c0_17 = arith.constant 0 : index
    %c0_18 = arith.constant 0 : index
    %27 = vector.load %arg4[%c0_17, %c0_18] : memref<1x128xf32, #tpu.memory_space<vmem>>, vector<1x128xf32>
    %28 = vector.broadcast %27 : vector<1x128xf32> to vector<64x128xf32>
    %29 = arith.addf %26, %28 : vector<64x128xf32>
    %c0_19 = arith.constant 0 : index
    %c0_20 = arith.constant 0 : index
    %c0_21 = arith.constant 0 : index
    %c0_22 = arith.constant 0 : index
    %30 = vector.load %arg5[%c0_19, %c0_20, %c0_21, %c0_22] : memref<1x8x8x128xbf16, #tpu.memory_space<vmem>>, vector<1x8x8x128xbf16>
    %31 = vector.shape_cast %30 : vector<1x8x8x128xbf16> to vector<8x8x128xbf16>
    %32 = vector.shape_cast %31 : vector<8x8x128xbf16> to vector<64x128xbf16>
    %33 = arith.extf %32 : vector<64x128xbf16> to vector<64x128xf32>
    %34 = arith.addf %29, %33 : vector<64x128xf32>
    %cst_23 = arith.constant 0.000000e+00 : f32
    %35 = vector.broadcast %cst_23 : f32 to vector<64x128xf32>
    %36 = arith.maximumf %34, %35 : vector<64x128xf32>
    %37 = vector.shape_cast %36 : vector<64x128xf32> to vector<8x8x128xf32>
    %38 = arith.truncf %37 : vector<8x8x128xf32> to vector<8x8x128xbf16>
    %c0_24 = arith.constant 0 : index
    %c0_25 = arith.constant 0 : index
    %c0_26 = arith.constant 0 : index
    %c0_27 = arith.constant 0 : index
    %39 = vector.load %arg6[%c0_24, %c0_25, %c0_26, %c0_27] : memref<1x8x8x128xbf16, #tpu.memory_space<vmem>>, vector<1x8x8x128xbf16>
    %40 = vector.shape_cast %39 : vector<1x8x8x128xbf16> to vector<8x8x128xbf16>
    %41 = vector.shape_cast %38 : vector<8x8x128xbf16> to vector<1x8x8x128xbf16>
    tpu.vector_store %arg6[%c0_24, %c0_25, %c0_26, %c0_27], %41 {strides = array<i32>} : memref<1x8x8x128xbf16, #tpu.memory_space<vmem>>, vector<1x8x8x128xbf16>,
    return
  }
  func.func @transform_0(%arg0: i32, %arg1: i32) -> (i32, i32, i32, i32) {
    %c0_i32 = arith.constant 0 : i32
    %c0_i32_0 = arith.constant 0 : i32
    %c0_i32_1 = arith.constant 0 : i32
    %c0_i32_2 = arith.constant 0 : i32
    return %arg0, %c0_i32, %c0_i32_0, %c0_i32_1 : i32, i32, i32, i32
  }
  func.func @transform_1(%arg0: i32, %arg1: i32) -> (i32, i32, i32) {
    %c0_i32 = arith.constant 0 : i32
    %c0_i32_0 = arith.constant 0 : i32
    %c0_i32_1 = arith.constant 0 : i32
    %c0_i32_2 = arith.constant 0 : i32
    return %c0_i32, %c0_i32_0, %c0_i32_1 : i32, i32, i32
  }
  func.func @transform_2(%arg0: i32, %arg1: i32) -> (i32, i32) {
    %c0_i32 = arith.constant 0 : i32
    %c0_i32_0 = arith.constant 0 : i32
    %c0_i32_1 = arith.constant 0 : i32
    return %c0_i32, %c0_i32_0 : i32, i32
  }
  func.func @transform_3(%arg0: i32, %arg1: i32) -> (i32, i32, i32, i32) {
    %c0_i32 = arith.constant 0 : i32
    %c0_i32_0 = arith.constant 0 : i32
    %c0_i32_1 = arith.constant 0 : i32
    return %arg0, %arg1, %c0_i32, %c0_i32_0 : i32, i32, i32, i32
  }
  func.func @transform_4(%arg0: i32, %arg1: i32) -> (i32, i32, i32, i32) {
    %c0_i32 = arith.constant 0 : i32
    %c0_i32_0 = arith.constant 0 : i32
    %c0_i32_1 = arith.constant 0 : i32
    return %arg0, %arg1, %c0_i32, %c0_i32_0 : i32, i32, i32, i32
  }
}

</mosaic_0001>

<bundles_post_ra>
// kernel: basic_block_forward.3
= control target key start
LH: loop header
LB: loop body
LE: loop exit
PB: predicated region body
PF: predicated region fallthrough
CT: control target
= control target key end

     0   :  { %s551_s12 = smov 0   ;;  %s553_s13 = smov 0   ;;  %s590_s0 = inlined_call_operand.vmem [shape: bf16[2,8,8,4], index: 0, kind: input, shape index: {}]   ;;  %s591_s1 = inlined_call_operand.vmem [shape: bf16[1,4,128], index: 1, kind: input, shape index: {}]   ;;  %s592_s2 = inlined_call_operand.vmem [shape: f32[1,128], index: 2, kind: input, shape index: {}]   ;;  %s593_s3 = inlined_call_operand.vmem [shape: bf16[2,8,8,128], index: 3, kind: output, shape index: {}]  }
   0x1   :  { %s555_s14 = smov 0  }
   0x2 LB: > { %s25_s15 = sadd.s32 1, %s525_s13  ;;  %p419_p0 = scmp.ge.s32.totalorder %s529_s14, 1  ;;  %s529_s14 = sphi %s555_s14, %s13_s14   ;;  %s525_s13 = sphi %s553_s13, %s595_s13   ;;  %s521_s12 = sphi %s551_s12, %s594_s12  }
   0x3   : > { %p27_p1 = scmp.ge.s32.totalorder %s25_s15, 2  ;;  %p151_p2 = scmp.lt.s32.totalorder %s529_s14, 3 }
   0x5   : > { %s597_s15 = smov (%p27_p1, %s25_s15), 0  ;;  %p152_p3 = pnand %p419_p0, %p151_p2 }
   0x6   : > { %p179_p4 = scmp.lt.s32.totalorder (!%p152_p3), %s521_s12, 1 }
   0x7   : > { %155 = sbr.rel (%p152_p3) target bundleno = 221 (0xdd), region = 32 }
   0xc   : > { %v206_v0 = vld [vmem:[%s591_s1] sm:$0x3]  ;;  %vm247_vm0 = vcmask 1041408   ;;  %s599_s12 = smov (!%p179_p4, %s521_s12), 1  ;;  %vm234_vm1 = vcmask 31744  }
   0xd   : > { %477 = vmatprep.subr.msk.bf16.mxu0 %vm247_vm0, %v206_v0  ;;  %478 = vmatprep.subr.msk.bf16.mxu1 %vm247_vm0, %v206_v0  ;;  %v249_v1 = vsel %vm247_vm0, %v206_v0, 0  ;;  %s435_s18 = sshll.u32 %s599_s12, 5  ;;  %v424_v8 = vld [vmem:[%s592_s2] ss:$0 sm:$0xff] }
   0xe   : > { %466 = vmatpush3.bf16.msra.mxu0 %v249_v1  ;;  %476 = vmatpush3.bf16.msra.mxu1 %v249_v1  ;;  %s183_s21 = scalar_lea.vmem %s590_s0, %s435_s18  ;;  %s192_s26 = scalar_lea.vmem %s593_s3, %s435_s18 }
   0xf   : > { %v503_v2 = vld [vmem:[%s183_s21] sm:$0xff]   ;;  %v504_v3 = vld [vmem:[%s183_s21 + $0x10] sm:$0xff]   ;;  %v505_v4 = vld [vmem:[%s183_s21 + $0x8] sm:$0xff]  }
  0x10   : > { %467 = vmatprep.mubr.msk.bf16.mxu0 %vm234_vm1, %v503_v2  ;;  %471 = vmatprep.mubr.msk.bf16.mxu1 %vm234_vm1, %v504_v3  ;;  %v506_v5 = vld [vmem:[%s183_s21 + $0x18] sm:$0xff]  }
  0x11   : > { %468 = vmatmul.mubr.msk.bf16.vlgmr.msra.gmra.mxu0 %vm234_vm1, %v505_v4  ;;  %472 = vmatmul.mubr.msk.bf16.vlgmr.msra.gmra.mxu1 %vm234_vm1, %v506_v5 }
  0xd1   : > { %v469_v6 = vpop.f32.mrf.mxu0  ;;  %v473_v7 = vpop.f32.mrf.mxu1 }
  0xd2   : > { %v294_v12 = vadd.f32 %v469_v6, %v424_v8  ;;  %v310_v15 = vadd.f32 %v473_v7, %v424_v8 }
  0xd3   : > { %v285_v9 = vpop.f32.mrf.mxu0  ;;  %v301_v10 = vpop.f32.mrf.mxu1 }
  0xd4   : > { %v286_v18 = vadd.f32 %v424_v8, %v285_v9  ;;  %v302_v22 = vadd.f32 %v424_v8, %v301_v10 }
  0xd5   : > { %v470_v11 = vpop.f32.mrf.mxu0  ;;  %v474_v14 = vpop.f32.mrf.mxu1 }
  0xd6   : > { %v297_v13 = vadd.f32 %v470_v11, %v424_v8  ;;  %v313_v16 = vadd.f32 %v474_v14, %v424_v8 }
  0xd7   : > { %v288_v17 = vpop.f32.mrf.mxu0  ;;  %v304_v21 = vpop.f32.mrf.mxu1 }
  0xd8   : > { %v445_v19 = vpack.c.bf16 %v297_v13, %v294_v12  ;;  %v289_v20 = vadd.f32 %v424_v8, %v288_v17  ;;  %v455_v23 = vpack.c.bf16 %v313_v16, %v310_v15  ;;  %v305_v24 = vadd.f32 %v424_v8, %v304_v21 }
  0xda   : > { %457 = vst [vmem:[%s192_s26 + $0x8] sm:$0xff] %v445_v19   ;;  %v440_v25 = vpack.c.bf16 %v289_v20, %v286_v18  ;;  %459 = vst [vmem:[%s192_s26 + $0x18] sm:$0xff] %v455_v23   ;;  %v450_v26 = vpack.c.bf16 %v305_v24, %v302_v22 }
  0xdc   : > { %441 = vst [vmem:[%s192_s26] sm:$0xff] %v440_v25   ;;  %458 = vst [vmem:[%s192_s26 + $0x10] sm:$0xff] %v450_v26  }
  0xdd PF: > { %s13_s14 = sadd.s32 1, %s529_s14   ;;  %s594_s12 = smov %s525_s13 }
  0xde   : > { %p10_p5 = scmp.ge.s32.totalorder %s13_s14, 4   ;;  %s595_s13 = smov %s597_s15 }
  0xe0   :  { %12 = sbr.rel (!%p10_p5) target bundleno = 2 (0x2), region = 63 }

// kernel: basic_block_forward.4
= control target key start
LH: loop header
LB: loop body
LE: loop exit
PB: predicated region body
PF: predicated region fallthrough
CT: control target
= control target key end

     0   :  { %s908_s12 = smov 0   ;;  %s910_s13 = smov 0   ;;  %s976_s0 = inlined_call_operand.vmem [shape: bf16[2,2,9,8,12], index: 0, kind: input, shape index: {}]   ;;  %s977_s1 = inlined_call_operand.vmem [shape: bf16[3,12,128], index: 1, kind: input, shape index: {}]   ;;  %s978_s2 = inlined_call_operand.vmem [shape: f32[1,128], index: 2, kind: input, shape index: {}]   ;;  %s979_s3 = inlined_call_operand.vmem [shape: bf16[2,8,8,128], index: 3, kind: output, shape index: {}]  }
   0x1   :  { %s912_s14 = smov 0  }
   0x2 LB: > { %s25_s15 = sadd.s32 1, %s882_s13  ;;  %p695_p0 = scmp.ge.s32.totalorder %s886_s14, 1  ;;  %s886_s14 = sphi %s912_s14, %s13_s14   ;;  %s882_s13 = sphi %s910_s13, %s981_s13   ;;  %s878_s12 = sphi %s908_s12, %s980_s12  }
   0x3   : > { %p27_p1 = scmp.ge.s32.totalorder %s25_s15, 2  ;;  %p151_p2 = scmp.lt.s32.totalorder %s886_s14, 3 }
   0x5   : > { %s983_s15 = smov (%p27_p1, %s25_s15), 0  ;;  %p152_p3 = pnand %p695_p0, %p151_p2 }
   0x6   : > { %p179_p4 = scmp.lt.s32.totalorder (!%p152_p3), %s878_s12, 1 }
   0x7   : > { %155 = sbr.rel (%p152_p3) target bundleno = 244 (0xf4), region = 32 }
   0xc   : > { %v849_v0 = vld [vmem:[%s977_s1 + $0x8] sm:$0x3f]   ;;  %vm260_vm0 = vcmask 1045504   ;;  %v852_v2 = vld [vmem:[%s977_s1] sm:$0x3f]   ;;  %s985_s12 = smov (!%p179_p4, %s878_s12), 1 }
   0xd   : > { %821 = vmatprep.subr.msk.bf16.mxu1 %vm260_vm0, %v849_v0  ;;  %820 = vmatprep.subr.msk.bf16.mxu0 %vm260_vm0, %v849_v0  ;;  %v262_v1 = vsel %vm260_vm0, %v849_v0, 0  ;;  %v855_v3 = vld [vmem:[%s977_s1 + $0x10] sm:$0x3f]   ;;  %s824_s22 = smul.u32 72, %s985_s12  ;;  %vm247_vm1 = vcmask 97280   ;;  %v367_v9 = vsel %vm260_vm0, %v852_v2, 0 }
   0xe   : > { %819 = vmatpush3.bf16.msra.mxu1 %v262_v1  ;;  %789 = vmatpush3.bf16.msra.mxu0 %v262_v1  ;;  %v486_v7 = vsel %vm260_vm0, %v855_v3, 0  ;;  %v746_v34 = vld [vmem:[%s978_s2] ss:$0 sm:$0xff]  ;;  %s749_s28 = sshll.u32 %s985_s12, 5 }
   0xf   : > { %822 = vmatprep.subr.msk.bf16.mxu1 %vm260_vm0, %v852_v2  ;;  %823 = vmatprep.subr.msk.bf16.mxu0 %vm260_vm0, %v855_v3  ;;  %s183_s25 = scalar_lea.vmem %s976_s0, %s824_s22  ;;  %s192_s4 = scalar_lea.vmem %s979_s3, %s749_s28 }
  0x10   : > { %v850_v4 = vld [vmem:[%s183_s25 + $0x24] sm:$0xff]   ;;  %v851_v5 = vld [vmem:[%s183_s25 + $0x34] sm:$0xff]   ;;  %v853_v6 = vld [vmem:[%s183_s25 + $0x2c] sm:$0xff]  }
  0x11   : > { %790 = vmatprep.mubr.msk.bf16.mxu0 %vm247_vm1, %v850_v4  ;;  %794 = vmatprep.mubr.msk.bf16.mxu1 %vm247_vm1, %v851_v5  ;;  %v854_v8 = vld [vmem:[%s183_s25 + $0x3c] sm:$0xff]   ;;  %v857_v11 = vld [vmem:[%s183_s25 + $0x4] sm:$0xff]   ;;  %v859_v13 = vld [vmem:[%s183_s25 + $0xc] sm:$0xff]  }
  0x12   : > { %791 = vmatmul.mubr.msk.bf16.vlgmr.msra.gmra.mxu0 %vm247_vm1, %v853_v6  ;;  %v856_v10 = vld [vmem:[%s183_s25] sm:$0xff]   ;;  %795 = vmatmul.mubr.msk.bf16.vlgmr.msra.gmra.mxu1 %vm247_vm1, %v854_v8  ;;  %v858_v12 = vld [vmem:[%s183_s25 + $0x8] sm:$0xff]   ;;  %v861_v14 = vld [vmem:[%s183_s25 + $0x14] sm:$0xff]  }
  0x13   : > { %809 = vmatpush3.bf16.msra.mxu0 %v486_v7  ;;  %799 = vmatpush3.bf16.msra.mxu1 %v367_v9  ;;  %v860_v15 = vld [vmem:[%s183_s25 + $0x10] sm:$0xff]   ;;  %v863_v16 = vld [vmem:[%s183_s25 + $0x1c] sm:$0xff]  }
  0x14   : > { %800 = vmatprep.mubr.msk.bf16.mxu1 %vm247_vm1, %v856_v10  ;;  %810 = vmatprep.mubr.msk.bf16.mxu0 %vm247_vm1, %v857_v11  ;;  %v862_v17 = vld [vmem:[%s183_s25 + $0x18] sm:$0xff]  }
  0x1a   : > { %811 = vmatmul.mubr.msk.bf16.vlgmr.msra.gmra.mxu0 %vm247_vm1, %v859_v13  ;;  %801 = vmatmul.mubr.msk.bf16.vlgmr.msra.gmra.mxu1 %vm247_vm1, %v858_v12 }
  0x1b   : > { %814 = vmatprep.mubr.msk.bf16.mxu0 %vm247_vm1, %v861_v14  ;;  %804 = vmatprep.mubr.msk.bf16.mxu1 %vm247_vm1, %v860_v15 }
  0x22   : > { %815 = vmatmul.mubr.msk.bf16.gmra.mxu0 %vm247_vm1, %v863_v16  ;;  %805 = vmatmul.mubr.msk.bf16.gmra.mxu1 %vm247_vm1, %v862_v17 }
  0xd2   : > { %v792_v18 = vpop.f32.mrf.mxu0  ;;  %v796_v19 = vpop.f32.mrf.mxu1 }
  0xd4   : > { %v298_v20 = vpop.f32.mrf.mxu0  ;;  %v314_v21 = vpop.f32.mrf.mxu1 }
  0xd6   : > { %v793_v22 = vpop.f32.mrf.mxu0  ;;  %v797_v23 = vpop.f32.mrf.mxu1 }
  0xd8   : > { %v301_v24 = vpop.f32.mrf.mxu0  ;;  %v317_v25 = vpop.f32.mrf.mxu1 }
  0xda   : > { %v812_v26 = vpop.f32.mrf.mxu0  ;;  %v802_v27 = vpop.f32.mrf.mxu1 }
  0xdb   : > { %v412_v28 = vadd.f32 %v802_v27, %v792_v18 }
  0xdc   : > { %v522_v29 = vpop.f32.mrf.mxu0  ;;  %v403_v30 = vpop.f32.mrf.mxu1 }
  0xdd   : > { %v555_v31 = vadd.f32 %v812_v26, %v412_v28  ;;  %v404_v32 = vadd.f32 %v403_v30, %v298_v20 }
  0xde   : > { %v813_v33 = vpop.f32.mrf.mxu0  ;;  %v803_v35 = vpop.f32.mrf.mxu1 }
  0xdf   : > { %v553_v36 = vadd.f32 %v522_v29, %v404_v32  ;;  %v415_v37 = vadd.f32 %v803_v35, %v793_v22  ;;  %v570_v40 = vadd.f32 %v746_v34, %v555_v31 }
  0xe0   : > { %v525_v38 = vpop.f32.mrf.mxu0  ;;  %v406_v39 = vpop.f32.mrf.mxu1 }
  0xe1   : > { %v556_v41 = vadd.f32 %v813_v33, %v415_v37  ;;  %v407_v42 = vadd.f32 %v406_v39, %v301_v24  ;;  %v568_v45 = vadd.f32 %v746_v34, %v553_v36  ;;  %v578_v51 = vmax.f32 %v570_v40, 0.0 }
  0xe2   : > { %v816_v43 = vpop.f32.mrf.mxu0  ;;  %v806_v44 = vpop.f32.mrf.mxu1 }
  0xe3   : > { %v571_v46 = vadd.f32 %v746_v34, %v556_v41  ;;  %v554_v47 = vadd.f32 %v525_v38, %v407_v42  ;;  %v428_v48 = vadd.f32 %v806_v44, %v796_v19  ;;  %v576_v58 = vmax.f32 %v568_v45, 0.0 }
  0xe4   : > { %v538_v49 = vpop.f32.mrf.mxu0  ;;  %v419_v50 = vpop.f32.mrf.mxu1 }
  0xe5   : > { %v579_v52 = vmax.f32 %v571_v46, 0.0  ;;  %v569_v53 = vadd.f32 %v746_v34, %v554_v47  ;;  %v420_v54 = vadd.f32 %v419_v50, %v314_v21  ;;  %v559_v55 = vadd.f32 %v816_v43, %v428_v48 }
  0xe6   : > { %v807_v56 = vpop.f32.mrf.mxu1  ;;  %v817_v57 = vpop.f32.mrf.mxu0 }
  0xe7   : > { %v758_v59 = vpack.c.bf16 %v579_v52, %v578_v51  ;;  %v577_v60 = vmax.f32 %v569_v53, 0.0  ;;  %v557_v61 = vadd.f32 %v538_v49, %v420_v54  ;;  %v431_v62 = vadd.f32 %v807_v56, %v797_v23 }
  0xe8   : > { %v422_v63 = vpop.f32.mrf.mxu1  ;;  %v574_v2 = vadd.f32 %v746_v34, %v559_v55  ;;  %v541_v4 = vpop.f32.mrf.mxu0 }
  0xe9   : > { %770 = vst [vmem:[%s192_s4 + $0x8] sm:$0xff] %v758_v59   ;;  %v753_v0 = vpack.c.bf16 %v577_v60, %v576_v58  ;;  %v423_v1 = vadd.f32 %v422_v63, %v317_v25  ;;  %v560_v3 = vadd.f32 %v817_v57, %v431_v62  ;;  %v572_v5 = vadd.f32 %v746_v34, %v557_v61 }
  0xea   : > { %v582_v9 = vmax.f32 %v574_v2, 0.0 }
  0xeb   : > { %754 = vst [vmem:[%s192_s4] sm:$0xff] %v753_v0   ;;  %v558_v6 = vadd.f32 %v541_v4, %v423_v1  ;;  %v575_v7 = vadd.f32 %v746_v34, %v560_v3  ;;  %v580_v11 = vmax.f32 %v572_v5, 0.0 }
  0xed   : > { %v573_v8 = vadd.f32 %v746_v34, %v558_v6  ;;  %v583_v10 = vmax.f32 %v575_v7, 0.0 }
  0xef   : > { %v581_v12 = vmax.f32 %v573_v8, 0.0  ;;  %v768_v13 = vpack.c.bf16 %v583_v10, %v582_v9 }
  0xf1   : > { %v763_v14 = vpack.c.bf16 %v581_v12, %v580_v11  ;;  %772 = vst [vmem:[%s192_s4 + $0x18] sm:$0xff] %v768_v13  }
  0xf3   : > { %771 = vst [vmem:[%s192_s4 + $0x10] sm:$0xff] %v763_v14  }
  0xf4 PF: > { %s13_s14 = sadd.s32 1, %s886_s14   ;;  %s980_s12 = smov %s882_s13 }
  0xf5   : > { %p10_p5 = scmp.ge.s32.totalorder %s13_s14, 4   ;;  %s981_s13 = smov %s983_s15 }
  0xf7   :  { %12 = sbr.rel (!%p10_p5) target bundleno = 2 (0x2), region = 67 }

// kernel: basic_block_forward.5
= control target key start
LH: loop header
LB: loop body
LE: loop exit
PB: predicated region body
PF: predicated region fallthrough
CT: control target
= control target key end

     0   :  { %s1074_s15 = smov 0   ;;  %s1076_s16 = smov 0   ;;  %s1188_s0 = inlined_call_operand.vmem [shape: bf16[2,10,8,24], index: 0, kind: input, shape index: {}]   ;;  %s1189_s1 = inlined_call_operand.vmem [shape: bf16[3,24,128], index: 1, kind: input, shape index: {}]   ;;  %s1190_s2 = inlined_call_operand.vmem [shape: f32[1,128], index: 2, kind: input, shape index: {}]   ;;  %s1191_s3 = inlined_call_operand.vmem [shape: bf16[2,8,8,128], index: 3, kind: input, shape index: {}]   ;;  %s1192_s4 = inlined_call_operand.vmem [shape: bf16[2,8,8,128], index: 4, kind: output, shape index: {}]  }
   0x1   :  { %s1078_s17 = smov 0  }
   0x2 LB: > { %s26_s18 = sadd.s32 1, %s1043_s16  ;;  %p815_p0 = scmp.ge.s32.totalorder %s1047_s17, 1  ;;  %s1047_s17 = sphi %s1078_s17, %s14_s17   ;;  %s1043_s16 = sphi %s1076_s16, %s1194_s16   ;;  %s1039_s15 = sphi %s1074_s15, %s1193_s15  }
   0x3   : > { %p28_p1 = scmp.ge.s32.totalorder %s26_s18, 2  ;;  %p193_p2 = scmp.lt.s32.totalorder %s1047_s17, 3 }
   0x5   : > { %s1196_s18 = smov (%p28_p1, %s26_s18), 0  ;;  %p194_p3 = pnand %p815_p0, %p193_p2 }
   0x6   : > { %p232_p4 = scmp.lt.s32.totalorder (!%p194_p3), %s1039_s15, 1 }
   0x7   : > { %197 = sbr.rel (%p194_p3) target bundleno = 250 (0xfa), region = 36 }
   0xc   : > { %v1007_v0 = vld [vmem:[%s1189_s1 + $0x14] ss:$0 sps:$4 sm:$0xff]   ;;  %vm329_vm0 = vcmask 1043456   ;;  %v1008_v1 = vld [vmem:[%s1189_s1 + $0xc] sm:$0xff]   ;;  %s1198_s15 = smov (!%p232_p4, %s1039_s15), 1  ;;  %vm316_vm1 = vcmask 195584  }
   0xd   : > { %978 = vmatprep.subr.msk.bf16.mxu0 %vm329_vm0, %v1007_v0  ;;  %979 = vmatprep.subr.msk.bf16.mxu1 %vm329_vm0, %v1007_v0  ;;  %v331_v2 = vsel %vm329_vm0, %v1007_v0, 0  ;;  %v1013_v3 = vld [vmem:[%s1189_s1 + $0x8] ss:$0 sps:$4 sm:$0xff]   ;;  %v1014_v4 = vld [vmem:[%s1189_s1 + $0x20] ss:$0 sps:$4 sm:$0xff]   ;;  %s982_s27 = smul.u32 40, %s1198_s15 }
   0xe   : > { %939 = vmatpush3.bf16.msra.mxu0 %v331_v2  ;;  %976 = vmatpush3.bf16.msra.mxu1 %v331_v2  ;;  %v1016_v6 = vld [vmem:[%s1189_s1 + $0x18] sm:$0xff]   ;;  %v1015_v8 = vld [vmem:[%s1189_s1] sm:$0xff]   ;;  %v564_v10 = vsel %vm329_vm0, %v1014_v4, 0  ;;  %v440_v12 = vsel %vm329_vm0, %v1013_v3, 0  ;;  %s876_s9 = sshll.u32 %s1198_s15, 5 }
   0xf   : > { %940 = vmatprep.subr.bf16.mxu0 %v1008_v1  ;;  %975 = vmatprep.subr.bf16.mxu1 %v1008_v1  ;;  %s1113_s30 = scalar_lea.vmem %s1188_s0, %s982_s27  ;;  %s1155_s12 = scalar_lea.vmem %s1191_s3, %s876_s9  ;;  %v1161_v34 = vld [vmem:[%s1190_s2] ss:$0 sm:$0xff] }
  0x10   : > { %v1009_v5 = vld [vmem:[%s1113_s30 + $0x4] sm:$0xff]   ;;  %v1010_v7 = vld [vmem:[%s1113_s30 + $0x14] sm:$0xff]   ;;  %v1011_v9 = vld [vmem:[%s1113_s30 + $0xc] sm:$0xff]   ;;  %s255_s21 = scalar_lea.vmem %s1192_s4, %s876_s9 }
  0x11   : > { %942 = vmatprep.mubr.msk.bf16.mxu0 %vm316_vm1, %v1009_v5  ;;  %946 = vmatprep.mubr.msk.bf16.mxu1 %vm316_vm1, %v1010_v7  ;;  %v1012_v11 = vld [vmem:[%s1113_s30 + $0x1c] sm:$0xff]   ;;  %v1018_v14 = vld [vmem:[%s1113_s30 + $0x8] sm:$0xff]   ;;  %v1020_v16 = vld [vmem:[%s1113_s30 + $0x10] sm:$0xff]  }
  0x12   : > { %941 = vmatpush3.bf16.msra.mxu0 %v1008_v1  ;;  %977 = vmatpush3.bf16.msra.mxu1 %v1008_v1  ;;  %v1017_v13 = vld [vmem:[%s1113_s30] sm:$0xff]   ;;  %v1019_v15 = vld [vmem:[%s1113_s30 + $0x8] sm:$0xff]   ;;  %v1022_v17 = vld [vmem:[%s1113_s30 + $0x18] sm:$0xff]  }
  0x13   : > { %980 = vmatprep.subr.msk.bf16.mxu1 %vm329_vm0, %v1013_v3  ;;  %981 = vmatprep.subr.msk.bf16.mxu0 %vm329_vm0, %v1014_v4  ;;  %v1021_v18 = vld [vmem:[%s1113_s30 + $0x10] sm:$0xff]   ;;  %v1024_v19 = vld [vmem:[%s1113_s30 + $0x20] sm:$0xff]   ;;  %v1023_v20 = vld [vmem:[%s1113_s30 + $0x18] sm:$0xff]  }
  0x14   : > { %v914_v32 = vld [vmem:[%s1155_s12 + $0x8] sm:$0xff]   ;;  %v879_v38 = vld [vmem:[%s1155_s12] sm:$0xff]   ;;  %v916_v58 = vld [vmem:[%s1155_s12 + $0x18] sm:$0xff]  }
  0x15   : > { %943 = vmatmul.mubr.msk.bf16.vlgmr.msra.gmra.mxu0 %vm316_vm1, %v1011_v9  ;;  %947 = vmatmul.mubr.msk.bf16.vlgmr.msra.gmra.mxu1 %vm316_vm1, %v1012_v11  ;;  %v884_v40 = vunpack.c.l.bf16 %v914_v32  ;;  %v880_v46 = vunpack.c.l.bf16 %v879_v38  ;;  %v885_v50 = vunpack.c.h.bf16 %v914_v32  ;;  %v881_v57 = vunpack.c.h.bf16 %v879_v38  ;;  %v915_v9 = vld [vmem:[%s1155_s12 + $0x10] sm:$0xff]  }
  0x16   : > { %963 = vmatpush3.bf16.msra.mxu0 %v564_v10  ;;  %951 = vmatpush3.bf16.msra.mxu1 %v440_v12  ;;  %v892_v4 = vunpack.c.l.bf16 %v916_v58 }
  0x17   : > { %964 = vmatprep.subr.bf16.mxu0 %v1016_v6  ;;  %952 = vmatprep.subr.bf16.mxu1 %v1015_v8 }
  0x18   : > { %954 = vmatprep.mubr.msk.bf16.mxu1 %vm316_vm1, %v1017_v13  ;;  %966 = vmatprep.mubr.msk.bf16.mxu0 %vm316_vm1, %v1018_v14  ;;  %v893_v13 = vunpack.c.h.bf16 %v916_v58 }
  0x1a   : > { %965 = vmatpush3.bf16.msra.mxu0 %v1016_v6  ;;  %953 = vmatpush3.bf16.msra.mxu1 %v1015_v8 }
  0x1d   : > { %967 = vmatmul.mubr.msk.bf16.vlgmr.msra.gmra.mxu0 %vm316_vm1, %v1020_v16  ;;  %955 = vmatmul.mubr.msk.bf16.vlgmr.msra.gmra.mxu1 %vm316_vm1, %v1019_v15 }
  0x1e   : > { %970 = vmatprep.mubr.msk.bf16.mxu0 %vm316_vm1, %v1022_v17  ;;  %958 = vmatprep.mubr.msk.bf16.mxu1 %vm316_vm1, %v1021_v18 }
  0x25   : > { %971 = vmatmul.mubr.msk.bf16.gmra.mxu0 %vm316_vm1, %v1024_v19  ;;  %959 = vmatmul.mubr.msk.bf16.gmra.mxu1 %vm316_vm1, %v1023_v20  ;;  %v888_v20 = vunpack.c.l.bf16 %v915_v9 }
  0xd5   : > { %v944_v21 = vpop.f32.mrf.mxu0  ;;  %v948_v22 = vpop.f32.mrf.mxu1 }
  0xd7   : > { %v367_v23 = vpop.f32.mrf.mxu0  ;;  %v383_v24 = vpop.f32.mrf.mxu1 }
  0xd9   : > { %v945_v25 = vpop.f32.mrf.mxu0  ;;  %v949_v26 = vpop.f32.mrf.mxu1 }
  0xdb   : > { %v370_v27 = vpop.f32.mrf.mxu0  ;;  %v386_v28 = vpop.f32.mrf.mxu1 }
  0xdd   : > { %v968_v29 = vpop.f32.mrf.mxu0  ;;  %v956_v30 = vpop.f32.mrf.mxu1 }
  0xde   : > { %v485_v31 = vadd.f32 %v956_v30, %v944_v21 }
  0xdf   : > { %v600_v33 = vpop.f32.mrf.mxu0  ;;  %v476_v35 = vpop.f32.mrf.mxu1 }
  0xe0   : > { %v633_v36 = vadd.f32 %v968_v29, %v485_v31  ;;  %v477_v37 = vadd.f32 %v476_v35, %v367_v23 }
  0xe1   : > { %v969_v39 = vpop.f32.mrf.mxu0  ;;  %v957_v41 = vpop.f32.mrf.mxu1 }
  0xe2   : > { %v648_v42 = vadd.f32 %v1161_v34, %v633_v36  ;;  %v631_v43 = vadd.f32 %v600_v33, %v477_v37  ;;  %v488_v44 = vadd.f32 %v957_v41, %v945_v25 }
  0xe3   : > { %v603_v45 = vpop.f32.mrf.mxu0  ;;  %v479_v47 = vpop.f32.mrf.mxu1 }
  0xe4   : > { %v646_v48 = vadd.f32 %v1161_v34, %v631_v43  ;;  %v634_v49 = vadd.f32 %v969_v39, %v488_v44  ;;  %v480_v51 = vadd.f32 %v479_v47, %v370_v27  ;;  %v672_v53 = vadd.f32 %v884_v40, %v648_v42 }
  0xe5   : > { %v972_v52 = vpop.f32.mrf.mxu0  ;;  %v960_v54 = vpop.f32.mrf.mxu1  ;;  %v889_v27 = vunpack.c.h.bf16 %v915_v9 }
  0xe6   : > { %v649_v55 = vadd.f32 %v1161_v34, %v634_v49  ;;  %v632_v56 = vadd.f32 %v603_v45, %v480_v51  ;;  %v501_v60 = vadd.f32 %v960_v54, %v948_v22  ;;  %v670_v62 = vadd.f32 %v880_v46, %v646_v48 }
  0xe7   : > { %v616_v59 = vpop.f32.mrf.mxu0  ;;  %v492_v61 = vpop.f32.mrf.mxu1  ;;  %v680_v2 = vmax.f32 %v672_v53, 0.0 }
  0xe8   : > { %v673_v63 = vadd.f32 %v885_v50, %v649_v55  ;;  %v647_v0 = vadd.f32 %v1161_v34, %v632_v56  ;;  %v493_v1 = vadd.f32 %v492_v61, %v383_v24  ;;  %v637_v3 = vadd.f32 %v972_v52, %v501_v60 }
  0xe9   : > { %v961_v5 = vpop.f32.mrf.mxu1  ;;  %v973_v11 = vpop.f32.mrf.mxu0  ;;  %v678_v15 = vmax.f32 %v670_v62, 0.0 }
  0xea   : > { %v681_v6 = vmax.f32 %v673_v63, 0.0  ;;  %v671_v7 = vadd.f32 %v881_v57, %v647_v0  ;;  %v635_v8 = vadd.f32 %v616_v59, %v493_v1  ;;  %v504_v10 = vadd.f32 %v961_v5, %v949_v26 }
  0xeb   : > { %v652_v12 = vadd.f32 %v1161_v34, %v637_v3  ;;  %v495_v14 = vpop.f32.mrf.mxu1  ;;  %v619_v25 = vpop.f32.mrf.mxu0 }
  0xec   : > { %v902_v16 = vpack.c.bf16 %v681_v6, %v680_v2  ;;  %v679_v17 = vmax.f32 %v671_v7, 0.0  ;;  %v638_v18 = vadd.f32 %v973_v11, %v504_v10  ;;  %v650_v19 = vadd.f32 %v1161_v34, %v635_v8 }
  0xed   : > { %v496_v21 = vadd.f32 %v495_v14, %v386_v28  ;;  %v676_v23 = vadd.f32 %v892_v4, %v652_v12 }
  0xee   : > { %917 = vst [vmem:[%s255_s21 + $0x8] sm:$0xff] %v902_v16   ;;  %v897_v22 = vpack.c.bf16 %v679_v17, %v678_v15  ;;  %v653_v24 = vadd.f32 %v1161_v34, %v638_v18  ;;  %v674_v30 = vadd.f32 %v888_v20, %v650_v19 }
  0xef   : > { %v636_v26 = vadd.f32 %v619_v25, %v496_v21  ;;  %v684_v32 = vmax.f32 %v676_v23, 0.0 }
  0xf0   : > { %898 = vst [vmem:[%s255_s21] sm:$0xff] %v897_v22   ;;  %v677_v29 = vadd.f32 %v893_v13, %v653_v24  ;;  %v682_v37 = vmax.f32 %v674_v30, 0.0 }
  0xf1   : > { %v651_v31 = vadd.f32 %v1161_v34, %v636_v26 }
  0xf2   : > { %v685_v33 = vmax.f32 %v677_v29, 0.0 }
  0xf3   : > { %v675_v35 = vadd.f32 %v889_v27, %v651_v31 }
  0xf4   : > { %v912_v36 = vpack.c.bf16 %v685_v33, %v684_v32 }
  0xf5   : > { %v683_v38 = vmax.f32 %v675_v35, 0.0 }
  0xf6   : > { %919 = vst [vmem:[%s255_s21 + $0x18] sm:$0xff] %v912_v36  }
  0xf7   : > { %v907_v28 = vpack.c.bf16 %v683_v38, %v682_v37 }
  0xf9   : > { %918 = vst [vmem:[%s255_s21 + $0x10] sm:$0xff] %v907_v28  }
  0xfa PF: > { %s14_s17 = sadd.s32 1, %s1047_s17   ;;  %s1193_s15 = smov %s1043_s16 }
  0xfb   : > { %p11_p5 = scmp.ge.s32.totalorder %s14_s17, 4   ;;  %s1194_s16 = smov %s1196_s18 }
  0xfd   :  { %13 = sbr.rel (!%p11_p5) target bundleno = 2 (0x2), region = 74 }

</bundles_post_ra>
